<compile_context>
chip_gen: v7x
topology: tpu7x:2x2x1
jax: 0.10.0
libtpu: 0.0.40
codegen_flags: <defaults>
</compile_context>

<pallas_src>
import functools

import jax
import jax.numpy as jnp
from jax.experimental import pallas as pl
from jax.experimental.pallas import tpu as pltpu


def _round_up(x, m):
    return ((x + m - 1) // m) * m


def _pick_tk(kp, cin, cout, tb, budget_bytes=20 * 1024 * 1024):
    """Largest K tile (multiple of 128, divides kp) whose double-buffered
    VMEM footprint (weights + activations + output, f32) fits the budget."""
    cols = 2 * cin * cout + 2 * tb * cin + 2 * tb * cout   # f32 per k column
    per_k = cols * 4 * 2                                   # x2: double buffering
    for cand in (kp, 2048, 1024, 512, 256, 128):
        if cand <= kp and kp % cand == 0 and per_k * cand <= budget_bytes:
            return cand
    return 128


def _make_spectral_kernel(cin, cout, tb):
    """Kernel over one (batch-tile, K-tile) block.

    a_ref: (2, tb, cin, tk)   f32  [0]=real, [1]=imag
    w_ref: (2, cin, cout, tk) f32  [0]=wr,   [1]=wi
    o_ref: (2, tb, cout, tk)  f32  [0]=real, [1]=imag
    """
    def kernel(a_ref, w_ref, o_ref):
        tk = a_ref.shape[-1]
        for b in range(tb):                       # static unroll (tb <= 8)
            acc_r = jnp.zeros((cout, tk), jnp.float32)
            acc_i = jnp.zeros((cout, tk), jnp.float32)
            for i in range(cin):                  # static unroll over Cin
                # Broadcast each activation row to (cout, tk) exactly once.
                ar = jnp.broadcast_to(a_ref[0, b, i:i + 1, :], (cout, tk))
                ai = jnp.broadcast_to(a_ref[1, b, i:i + 1, :], (cout, tk))
                wr = w_ref[0, i]                  # (cout, tk)
                wi = w_ref[1, i]
                # Direct complex multiply-accumulate: 4 mults + 4 adds (VPU).
                acc_r = acc_r + (ar * wr - ai * wi)
                acc_i = acc_i + (ar * wi + ai * wr)
            o_ref[0, b] = acc_r
            o_ref[1, b] = acc_i
    return kernel


def _complex_mode_mul(a_ri, w_pack, cout, tb, tk):
    """a_ri: (2, Bp, Cin, Kp) f32, w_pack: (2, Cin, Cout, Kp) f32.
       Returns (2, Bp, Cout, Kp) f32 with out[b,o,k] = sum_i a[b,i,k]*w[i,o,k]
       (complex)."""
    _, bp, cin, kp = a_ri.shape
    nk = kp // tk
    nb = bp // tb

    cost = pl.CostEstimate(
        flops=int(8 * bp * cin * cout * kp),
        transcendentals=0,
        bytes_accessed=int(4 * (a_ri.size + w_pack.size + 2 * bp * cout * kp)),
    )

    return pl.pallas_call(
        _make_spectral_kernel(cin, cout, tb),
        out_shape=jax.ShapeDtypeStruct((2, bp, cout, kp), jnp.float32),
        grid_spec=pltpu.PrefetchScalarGridSpec(
            num_scalar_prefetch=0,
            # k outer, b inner: weight tile index depends only on k, so it
            # stays resident across the whole batch sweep (no re-DMA).
            grid=(nk, nb),
            in_specs=[
                pl.BlockSpec((2, tb, cin, tk), lambda k, b: (0, b, 0, k)),
                pl.BlockSpec((2, cin, cout, tk), lambda k, b: (0, 0, 0, k)),
            ],
            out_specs=pl.BlockSpec((2, tb, cout, tk), lambda k, b: (0, b, 0, k)),
        ),
        compiler_params=pltpu.CompilerParams(
            dimension_semantics=("parallel", "parallel"),
            vmem_limit_bytes=32 * 1024 * 1024),
        cost_estimate=cost,
    )(a_ri, w_pack)


@functools.partial(
    jax.jit, static_argnames=("out_channels", "modes1", "modes2", "tb", "tk"))
def _spectral_forward(x, w_pack, *, out_channels, modes1, modes2, tb, tk):
    B, Cin, H, W = x.shape
    m1, m2 = modes1, modes2
    Wf = W // 2 + 1
    K = 4 * m1 * m2
    Kp = w_pack.shape[-1]
    Bp = _round_up(B, tb)

    # FFT stays in plain JAX.  # TODO(synk): no Pallas FFT primitive on TPU.
    x_ft = jnp.fft.rfftn(x, axes=(-2, -1))           # (B, Cin, H, Wf) complex64

    # Gather the 4 retained mode corners and flatten: (B, Cin, K).
    c1 = x_ft[:, :, :m1, :m2]
    c2 = x_ft[:, :, H - m1:, :m2]
    c3 = x_ft[:, :, :m1, Wf - m2:]
    c4 = x_ft[:, :, H - m1:, Wf - m2:]
    a = jnp.stack([c1, c2, c3, c4], axis=2).reshape(B, Cin, K)

    # Pack real/imag and pad batch / lane (K) axes.
    a_ri = jnp.stack([jnp.real(a), jnp.imag(a)], axis=0).astype(jnp.float32)
    a_ri = jnp.pad(a_ri, ((0, 0), (0, Bp - B), (0, 0), (0, Kp - K)))

    # Hot path: complex einsum over the kept modes, in Pallas.
    out = _complex_mode_mul(a_ri, w_pack, out_channels, tb, tk)
    out_c = (out[0, :B, :, :K] + 1j * out[1, :B, :, :K]).astype(jnp.complex64)
    out_c = out_c.reshape(B, out_channels, 4, m1, m2)

    # Scatter back into the full (zero) spectrum and invert.
    out_ft = jnp.zeros((B, out_channels, H, Wf), dtype=jnp.complex64)
    out_ft = out_ft.at[:, :, :m1, :m2].set(out_c[:, :, 0])
    out_ft = out_ft.at[:, :, H - m1:, :m2].set(out_c[:, :, 1])
    out_ft = out_ft.at[:, :, :m1, Wf - m2:].set(out_c[:, :, 2])
    out_ft = out_ft.at[:, :, H - m1:, Wf - m2:].set(out_c[:, :, 3])
    return jnp.fft.irfftn(out_ft, s=(H, W), axes=(-2, -1))


class SpectralConv2d:
    """JAX/Pallas port of the PyTorch SpectralConv2d module."""

    def __init__(self, in_channels, out_channels, modes1, modes2, key):
        self.in_channels = in_channels
        self.out_channels = out_channels
        self.modes1 = modes1
        self.modes2 = modes2
        scale = 1.0 / (in_channels * out_channels)

        # torch.rand(..., dtype=cfloat) -> uniform[0,1) real & imag parts.
        ks = jax.random.split(key, 8)
        shp = (in_channels, out_channels, modes1, modes2)

        def cplx(kr, ki):
            return scale * (jax.random.uniform(kr, shp, jnp.float32)
                            + 1j * jax.random.uniform(ki, shp, jnp.float32)
                            ).astype(jnp.complex64)

        self.weights1 = cplx(ks[0], ks[1])
        self.weights2 = cplx(ks[2], ks[3])
        self.weights3 = cplx(ks[4], ks[5])
        self.weights4 = cplx(ks[6], ks[7])

        # Precompute the packed, K-padded kernel weights once:
        # (2, Cin, Cout, Kp) with planes [wr, wi],
        # Kp = round_up(4*m1*m2, 128) so the lane axis is dense.
        K = 4 * modes1 * modes2
        Kp = _round_up(K, 128)
        w = jnp.stack([self.weights1, self.weights2,
                       self.weights3, self.weights4], axis=2)
        w = w.reshape(in_channels, out_channels, K)
        wr = jnp.real(w).astype(jnp.float32)
        wi = jnp.imag(w).astype(jnp.float32)
        w_pack = jnp.stack([wr, wi], axis=0)
        self._w_pack = jnp.pad(w_pack, ((0, 0), (0, 0), (0, 0), (0, Kp - K)))
        self._K = K
        self._Kp = Kp

    def __call__(self, x):
        B = x.shape[0]
        tb = min(B, 8)                       # batch tile (amortize grid steps)
        tk = _pick_tk(self._Kp, self.in_channels, self.out_channels, tb)
        return _spectral_forward(
            x, self._w_pack,
            out_channels=self.out_channels,
            modes1=self.modes1, modes2=self.modes2,
            tb=tb, tk=tk)


def _reference_forward(mod, x):
    """Pure-JAX reference (mirrors the PyTorch forward exactly)."""
    B, Cin, H, W = x.shape
    m1, m2 = mod.modes1, mod.modes2
    Wf = W // 2 + 1
    x_ft = jnp.fft.rfftn(x, axes=(-2, -1))

    def mul(inp, wgt):
        return jnp.einsum('bixy,ioxy->boxy', inp, wgt)

    out_ft = jnp.zeros((B, mod.out_channels, H, Wf), dtype=jnp.complex64)
    out_ft = out_ft.at[:, :, :m1, :m2].set(mul(x_ft[:, :, :m1, :m2], mod.weights1))
    out_ft = out_ft.at[:, :, H - m1:, :m2].set(mul(x_ft[:, :, H - m1:, :m2], mod.weights2))
    out_ft = out_ft.at[:, :, :m1, Wf - m2:].set(mul(x_ft[:, :, :m1, Wf - m2:], mod.weights3))
    out_ft = out_ft.at[:, :, H - m1:, Wf - m2:].set(mul(x_ft[:, :, H - m1:, Wf - m2:], mod.weights4))
    return jnp.fft.irfftn(out_ft, s=(H, W), axes=(-2, -1))


if __name__ == "__main__":
    key = jax.random.PRNGKey(0)
    k_w, k_x = jax.random.split(key)

    B, Cin, Cout, H, W = 2, 4, 4, 16, 16
    modes1, modes2 = 4, 4

    mod = SpectralConv2d(Cin, Cout, modes1, modes2, k_w)
    x = jax.random.normal(k_x, (B, Cin, H, W), dtype=jnp.float32)

    y = jax.block_until_ready(mod(x))
    y_ref = jax.block_until_ready(_reference_forward(mod, x))

    assert y.shape == (B, Cout, H, W)
    assert jnp.allclose(y, y_ref, atol=1e-4, rtol=1e-4)

    print("KERNEL_OK")
</pallas_src>

<mosaic_0001>
module attributes {stable_mosaic.version = 11 : i64} {
  func.func @kernel(%arg0: i32, %arg1: i32, %arg2: memref<2x2x4x128xf32, #tpu.memory_space<vmem>>, %arg3: memref<2x4x4x128xf32, #tpu.memory_space<vmem>>, %arg4: memref<2x2x4x128xf32, #tpu.memory_space<vmem>>) attributes {dimension_semantics = [#tpu.dimension_semantics<parallel>, #tpu.dimension_semantics<parallel>], iteration_bounds = array<i64: 1, 1>, scalar_prefetch = 0 : i64, scratch_operands = 0 : i64, tpu.core_type = #tpu.core_type<tc>, window_params = [{transform_indices = @transform_0, window_bounds = array<i64: 2, 2, 4, 128>}, {transform_indices = @transform_1, window_bounds = array<i64: 2, 4, 4, 128>}, {transform_indices = @transform_2, window_bounds = array<i64: 2, 2, 4, 128>}]} {
    %cst = arith.constant 0.000000e+00 : f32
    %0 = vector.broadcast %cst : f32 to vector<4x128xf32>
    %cst_0 = arith.constant 0.000000e+00 : f32
    %1 = vector.broadcast %cst_0 : f32 to vector<4x128xf32>
    %c0 = arith.constant 0 : index
    %c0_1 = arith.constant 0 : index
    %c0_2 = arith.constant 0 : index
    %c0_3 = arith.constant 0 : index
    %2 = vector.load %arg2[%c0, %c0_1, %c0_2, %c0_3] : memref<2x2x4x128xf32, #tpu.memory_space<vmem>>, vector<1x1x1x128xf32>
    %3 = vector.shape_cast %2 : vector<1x1x1x128xf32> to vector<1x128xf32>
    %4 = vector.shape_cast %3 : vector<1x128xf32> to vector<1x128xf32>
    %5 = vector.broadcast %4 : vector<1x128xf32> to vector<4x128xf32>
    %c1 = arith.constant 1 : index
    %c0_4 = arith.constant 0 : index
    %c0_5 = arith.constant 0 : index
    %c0_6 = arith.constant 0 : index
    %6 = vector.load %arg2[%c1, %c0_4, %c0_5, %c0_6] : memref<2x2x4x128xf32, #tpu.memory_space<vmem>>, vector<1x1x1x128xf32>
    %7 = vector.shape_cast %6 : vector<1x1x1x128xf32> to vector<1x128xf32>
    %8 = vector.shape_cast %7 : vector<1x128xf32> to vector<1x128xf32>
    %9 = vector.broadcast %8 : vector<1x128xf32> to vector<4x128xf32>
    %c0_7 = arith.constant 0 : index
    %c0_8 = arith.constant 0 : index
    %c0_9 = arith.constant 0 : index
    %c0_10 = arith.constant 0 : index
    %10 = vector.load %arg3[%c0_7, %c0_8, %c0_9, %c0_10] : memref<2x4x4x128xf32, #tpu.memory_space<vmem>>, vector<1x1x4x128xf32>
    %11 = vector.shape_cast %10 : vector<1x1x4x128xf32> to vector<4x128xf32>
    %c1_11 = arith.constant 1 : index
    %c0_12 = arith.constant 0 : index
    %c0_13 = arith.constant 0 : index
    %c0_14 = arith.constant 0 : index
    %12 = vector.load %arg3[%c1_11, %c0_12, %c0_13, %c0_14] : memref<2x4x4x128xf32, #tpu.memory_space<vmem>>, vector<1x1x4x128xf32>
    %13 = vector.shape_cast %12 : vector<1x1x4x128xf32> to vector<4x128xf32>
    %14 = arith.mulf %5, %11 : vector<4x128xf32>
    %15 = arith.mulf %9, %13 : vector<4x128xf32>
    %16 = arith.subf %14, %15 : vector<4x128xf32>
    %17 = arith.addf %0, %16 : vector<4x128xf32>
    %18 = arith.mulf %5, %13 : vector<4x128xf32>
    %19 = arith.mulf %9, %11 : vector<4x128xf32>
    %20 = arith.addf %18, %19 : vector<4x128xf32>
    %21 = arith.addf %1, %20 : vector<4x128xf32>
    %c0_15 = arith.constant 0 : index
    %c0_16 = arith.constant 0 : index
    %c1_17 = arith.constant 1 : index
    %c0_18 = arith.constant 0 : index
    %22 = vector.load %arg2[%c0_15, %c0_16, %c1_17, %c0_18] : memref<2x2x4x128xf32, #tpu.memory_space<vmem>>, vector<1x1x1x128xf32>
    %23 = vector.shape_cast %22 : vector<1x1x1x128xf32> to vector<1x128xf32>
    %24 = vector.shape_cast %23 : vector<1x128xf32> to vector<1x128xf32>
    %25 = vector.broadcast %24 : vector<1x128xf32> to vector<4x128xf32>
    %c1_19 = arith.constant 1 : index
    %c0_20 = arith.constant 0 : index
    %c1_21 = arith.constant 1 : index
    %c0_22 = arith.constant 0 : index
    %26 = vector.load %arg2[%c1_19, %c0_20, %c1_21, %c0_22] : memref<2x2x4x128xf32, #tpu.memory_space<vmem>>, vector<1x1x1x128xf32>
    %27 = vector.shape_cast %26 : vector<1x1x1x128xf32> to vector<1x128xf32>
    %28 = vector.shape_cast %27 : vector<1x128xf32> to vector<1x128xf32>
    %29 = vector.broadcast %28 : vector<1x128xf32> to vector<4x128xf32>
    %c0_23 = arith.constant 0 : index
    %c1_24 = arith.constant 1 : index
    %c0_25 = arith.constant 0 : index
    %c0_26 = arith.constant 0 : index
    %30 = vector.load %arg3[%c0_23, %c1_24, %c0_25, %c0_26] : memref<2x4x4x128xf32, #tpu.memory_space<vmem>>, vector<1x1x4x128xf32>
    %31 = vector.shape_cast %30 : vector<1x1x4x128xf32> to vector<4x128xf32>
    %c1_27 = arith.constant 1 : index
    %c1_28 = arith.constant 1 : index
    %c0_29 = arith.constant 0 : index
    %c0_30 = arith.constant 0 : index
    %32 = vector.load %arg3[%c1_27, %c1_28, %c0_29, %c0_30] : memref<2x4x4x128xf32, #tpu.memory_space<vmem>>, vector<1x1x4x128xf32>
    %33 = vector.shape_cast %32 : vector<1x1x4x128xf32> to vector<4x128xf32>
    %34 = arith.mulf %25, %31 : vector<4x128xf32>
    %35 = arith.mulf %29, %33 : vector<4x128xf32>
    %36 = arith.subf %34, %35 : vector<4x128xf32>
    %37 = arith.addf %17, %36 : vector<4x128xf32>
    %38 = arith.mulf %25, %33 : vector<4x128xf32>
    %39 = arith.mulf %29, %31 : vector<4x128xf32>
    %40 = arith.addf %38, %39 : vector<4x128xf32>
    %41 = arith.addf %21, %40 : vector<4x128xf32>
    %c0_31 = arith.constant 0 : index
    %c0_32 = arith.constant 0 : index
    %c2 = arith.constant 2 : index
    %c0_33 = arith.constant 0 : index
    %42 = vector.load %arg2[%c0_31, %c0_32, %c2, %c0_33] : memref<2x2x4x128xf32, #tpu.memory_space<vmem>>, vector<1x1x1x128xf32>
    %43 = vector.shape_cast %42 : vector<1x1x1x128xf32> to vector<1x128xf32>
    %44 = vector.shape_cast %43 : vector<1x128xf32> to vector<1x128xf32>
    %45 = vector.broadcast %44 : vector<1x128xf32> to vector<4x128xf32>
    %c1_34 = arith.constant 1 : index
    %c0_35 = arith.constant 0 : index
    %c2_36 = arith.constant 2 : index
    %c0_37 = arith.constant 0 : index
    %46 = vector.load %arg2[%c1_34, %c0_35, %c2_36, %c0_37] : memref<2x2x4x128xf32, #tpu.memory_space<vmem>>, vector<1x1x1x128xf32>
    %47 = vector.shape_cast %46 : vector<1x1x1x128xf32> to vector<1x128xf32>
    %48 = vector.shape_cast %47 : vector<1x128xf32> to vector<1x128xf32>
    %49 = vector.broadcast %48 : vector<1x128xf32> to vector<4x128xf32>
    %c0_38 = arith.constant 0 : index
    %c2_39 = arith.constant 2 : index
    %c0_40 = arith.constant 0 : index
    %c0_41 = arith.constant 0 : index
    %50 = vector.load %arg3[%c0_38, %c2_39, %c0_40, %c0_41] : memref<2x4x4x128xf32, #tpu.memory_space<vmem>>, vector<1x1x4x128xf32>
    %51 = vector.shape_cast %50 : vector<1x1x4x128xf32> to vector<4x128xf32>
    %c1_42 = arith.constant 1 : index
    %c2_43 = arith.constant 2 : index
    %c0_44 = arith.constant 0 : index
    %c0_45 = arith.constant 0 : index
    %52 = vector.load %arg3[%c1_42, %c2_43, %c0_44, %c0_45] : memref<2x4x4x128xf32, #tpu.memory_space<vmem>>, vector<1x1x4x128xf32>
    %53 = vector.shape_cast %52 : vector<1x1x4x128xf32> to vector<4x128xf32>
    %54 = arith.mulf %45, %51 : vector<4x128xf32>
    %55 = arith.mulf %49, %53 : vector<4x128xf32>
    %56 = arith.subf %54, %55 : vector<4x128xf32>
    %57 = arith.addf %37, %56 : vector<4x128xf32>
    %58 = arith.mulf %45, %53 : vector<4x128xf32>
    %59 = arith.mulf %49, %51 : vector<4x128xf32>
    %60 = arith.addf %58, %59 : vector<4x128xf32>
    %61 = arith.addf %41, %60 : vector<4x128xf32>
    %c0_46 = arith.constant 0 : index
    %c0_47 = arith.constant 0 : index
    %c3 = arith.constant 3 : index
    %c0_48 = arith.constant 0 : index
    %62 = vector.load %arg2[%c0_46, %c0_47, %c3, %c0_48] : memref<2x2x4x128xf32, #tpu.memory_space<vmem>>, vector<1x1x1x128xf32>
    %63 = vector.shape_cast %62 : vector<1x1x1x128xf32> to vector<1x128xf32>
    %64 = vector.shape_cast %63 : vector<1x128xf32> to vector<1x128xf32>
    %65 = vector.broadcast %64 : vector<1x128xf32> to vector<4x128xf32>
    %c1_49 = arith.constant 1 : index
    %c0_50 = arith.constant 0 : index
    %c3_51 = arith.constant 3 : index
    %c0_52 = arith.constant 0 : index
    %66 = vector.load %arg2[%c1_49, %c0_50, %c3_51, %c0_52] : memref<2x2x4x128xf32, #tpu.memory_space<vmem>>, vector<1x1x1x128xf32>
    %67 = vector.shape_cast %66 : vector<1x1x1x128xf32> to vector<1x128xf32>
    %68 = vector.shape_cast %67 : vector<1x128xf32> to vector<1x128xf32>
    %69 = vector.broadcast %68 : vector<1x128xf32> to vector<4x128xf32>
    %c0_53 = arith.constant 0 : index
    %c3_54 = arith.constant 3 : index
    %c0_55 = arith.constant 0 : index
    %c0_56 = arith.constant 0 : index
    %70 = vector.load %arg3[%c0_53, %c3_54, %c0_55, %c0_56] : memref<2x4x4x128xf32, #tpu.memory_space<vmem>>, vector<1x1x4x128xf32>
    %71 = vector.shape_cast %70 : vector<1x1x4x128xf32> to vector<4x128xf32>
    %c1_57 = arith.constant 1 : index
    %c3_58 = arith.constant 3 : index
    %c0_59 = arith.constant 0 : index
    %c0_60 = arith.constant 0 : index
    %72 = vector.load %arg3[%c1_57, %c3_58, %c0_59, %c0_60] : memref<2x4x4x128xf32, #tpu.memory_space<vmem>>, vector<1x1x4x128xf32>
    %73 = vector.shape_cast %72 : vector<1x1x4x128xf32> to vector<4x128xf32>
    %74 = arith.mulf %65, %71 : vector<4x128xf32>
    %75 = arith.mulf %69, %73 : vector<4x128xf32>
    %76 = arith.subf %74, %75 : vector<4x128xf32>
    %77 = arith.addf %57, %76 : vector<4x128xf32>
    %78 = arith.mulf %65, %73 : vector<4x128xf32>
    %79 = arith.mulf %69, %71 : vector<4x128xf32>
    %80 = arith.addf %78, %79 : vector<4x128xf32>
    %81 = arith.addf %61, %80 : vector<4x128xf32>
    %c0_61 = arith.constant 0 : index
    %c0_62 = arith.constant 0 : index
    %c0_63 = arith.constant 0 : index
    %c0_64 = arith.constant 0 : index
    %82 = vector.load %arg4[%c0_61, %c0_62, %c0_63, %c0_64] : memref<2x2x4x128xf32, #tpu.memory_space<vmem>>, vector<1x1x4x128xf32>
    %83 = vector.shape_cast %82 : vector<1x1x4x128xf32> to vector<4x128xf32>
    %84 = vector.shape_cast %77 : vector<4x128xf32> to vector<1x1x4x128xf32>
    tpu.vector_store %arg4[%c0_61, %c0_62, %c0_63, %c0_64], %84 {strides = array<i32>} : memref<2x2x4x128xf32, #tpu.memory_space<vmem>>, vector<1x1x4x128xf32>,
    %c1_65 = arith.constant 1 : index
    %c0_66 = arith.constant 0 : index
    %c0_67 = arith.constant 0 : index
    %c0_68 = arith.constant 0 : index
    %85 = vector.load %arg4[%c1_65, %c0_66, %c0_67, %c0_68] : memref<2x2x4x128xf32, #tpu.memory_space<vmem>>, vector<1x1x4x128xf32>
    %86 = vector.shape_cast %85 : vector<1x1x4x128xf32> to vector<4x128xf32>
    %87 = vector.shape_cast %81 : vector<4x128xf32> to vector<1x1x4x128xf32>
    tpu.vector_store %arg4[%c1_65, %c0_66, %c0_67, %c0_68], %87 {strides = array<i32>} : memref<2x2x4x128xf32, #tpu.memory_space<vmem>>, vector<1x1x4x128xf32>,
    %cst_69 = arith.constant 0.000000e+00 : f32
    %88 = vector.broadcast %cst_69 : f32 to vector<4x128xf32>
    %cst_70 = arith.constant 0.000000e+00 : f32
    %89 = vector.broadcast %cst_70 : f32 to vector<4x128xf32>
    %c0_71 = arith.constant 0 : index
    %c1_72 = arith.constant 1 : index
    %c0_73 = arith.constant 0 : index
    %c0_74 = arith.constant 0 : index
    %90 = vector.load %arg2[%c0_71, %c1_72, %c0_73, %c0_74] : memref<2x2x4x128xf32, #tpu.memory_space<vmem>>, vector<1x1x1x128xf32>
    %91 = vector.shape_cast %90 : vector<1x1x1x128xf32> to vector<1x128xf32>
    %92 = vector.shape_cast %91 : vector<1x128xf32> to vector<1x128xf32>
    %93 = vector.broadcast %92 : vector<1x128xf32> to vector<4x128xf32>
    %c1_75 = arith.constant 1 : index
    %c1_76 = arith.constant 1 : index
    %c0_77 = arith.constant 0 : index
    %c0_78 = arith.constant 0 : index
    %94 = vector.load %arg2[%c1_75, %c1_76, %c0_77, %c0_78] : memref<2x2x4x128xf32, #tpu.memory_space<vmem>>, vector<1x1x1x128xf32>
    %95 = vector.shape_cast %94 : vector<1x1x1x128xf32> to vector<1x128xf32>
    %96 = vector.shape_cast %95 : vector<1x128xf32> to vector<1x128xf32>
    %97 = vector.broadcast %96 : vector<1x128xf32> to vector<4x128xf32>
    %c0_79 = arith.constant 0 : index
    %c0_80 = arith.constant 0 : index
    %c0_81 = arith.constant 0 : index
    %c0_82 = arith.constant 0 : index
    %98 = vector.load %arg3[%c0_79, %c0_80, %c0_81, %c0_82] : memref<2x4x4x128xf32, #tpu.memory_space<vmem>>, vector<1x1x4x128xf32>
    %99 = vector.shape_cast %98 : vector<1x1x4x128xf32> to vector<4x128xf32>
    %c1_83 = arith.constant 1 : index
    %c0_84 = arith.constant 0 : index
    %c0_85 = arith.constant 0 : index
    %c0_86 = arith.constant 0 : index
    %100 = vector.load %arg3[%c1_83, %c0_84, %c0_85, %c0_86] : memref<2x4x4x128xf32, #tpu.memory_space<vmem>>, vector<1x1x4x128xf32>
    %101 = vector.shape_cast %100 : vector<1x1x4x128xf32> to vector<4x128xf32>
    %102 = arith.mulf %93, %99 : vector<4x128xf32>
    %103 = arith.mulf %97, %101 : vector<4x128xf32>
    %104 = arith.subf %102, %103 : vector<4x128xf32>
    %105 = arith.addf %88, %104 : vector<4x128xf32>
    %106 = arith.mulf %93, %101 : vector<4x128xf32>
    %107 = arith.mulf %97, %99 : vector<4x128xf32>
    %108 = arith.addf %106, %107 : vector<4x128xf32>
    %109 = arith.addf %89, %108 : vector<4x128xf32>
    %c0_87 = arith.constant 0 : index
    %c1_88 = arith.constant 1 : index
    %c1_89 = arith.constant 1 : index
    %c0_90 = arith.constant 0 : index
    %110 = vector.load %arg2[%c0_87, %c1_88, %c1_89, %c0_90] : memref<2x2x4x128xf32, #tpu.memory_space<vmem>>, vector<1x1x1x128xf32>
    %111 = vector.shape_cast %110 : vector<1x1x1x128xf32> to vector<1x128xf32>
    %112 = vector.shape_cast %111 : vector<1x128xf32> to vector<1x128xf32>
    %113 = vector.broadcast %112 : vector<1x128xf32> to vector<4x128xf32>
    %c1_91 = arith.constant 1 : index
    %c1_92 = arith.constant 1 : index
    %c1_93 = arith.constant 1 : index
    %c0_94 = arith.constant 0 : index
    %114 = vector.load %arg2[%c1_91, %c1_92, %c1_93, %c0_94] : memref<2x2x4x128xf32, #tpu.memory_space<vmem>>, vector<1x1x1x128xf32>
    %115 = vector.shape_cast %114 : vector<1x1x1x128xf32> to vector<1x128xf32>
    %116 = vector.shape_cast %115 : vector<1x128xf32> to vector<1x128xf32>
    %117 = vector.broadcast %116 : vector<1x128xf32> to vector<4x128xf32>
    %c0_95 = arith.constant 0 : index
    %c1_96 = arith.constant 1 : index
    %c0_97 = arith.constant 0 : index
    %c0_98 = arith.constant 0 : index
    %118 = vector.load %arg3[%c0_95, %c1_96, %c0_97, %c0_98] : memref<2x4x4x128xf32, #tpu.memory_space<vmem>>, vector<1x1x4x128xf32>
    %119 = vector.shape_cast %118 : vector<1x1x4x128xf32> to vector<4x128xf32>
    %c1_99 = arith.constant 1 : index
    %c1_100 = arith.constant 1 : index
    %c0_101 = arith.constant 0 : index
    %c0_102 = arith.constant 0 : index
    %120 = vector.load %arg3[%c1_99, %c1_100, %c0_101, %c0_102] : memref<2x4x4x128xf32, #tpu.memory_space<vmem>>, vector<1x1x4x128xf32>
    %121 = vector.shape_cast %120 : vector<1x1x4x128xf32> to vector<4x128xf32>
    %122 = arith.mulf %113, %119 : vector<4x128xf32>
    %123 = arith.mulf %117, %121 : vector<4x128xf32>
    %124 = arith.subf %122, %123 : vector<4x128xf32>
    %125 = arith.addf %105, %124 : vector<4x128xf32>
    %126 = arith.mulf %113, %121 : vector<4x128xf32>
    %127 = arith.mulf %117, %119 : vector<4x128xf32>
    %128 = arith.addf %126, %127 : vector<4x128xf32>
    %129 = arith.addf %109, %128 : vector<4x128xf32>
    %c0_103 = arith.constant 0 : index
    %c1_104 = arith.constant 1 : index
    %c2_105 = arith.constant 2 : index
    %c0_106 = arith.constant 0 : index
    %130 = vector.load %arg2[%c0_103, %c1_104, %c2_105, %c0_106] : memref<2x2x4x128xf32, #tpu.memory_space<vmem>>, vector<1x1x1x128xf32>
    %131 = vector.shape_cast %130 : vector<1x1x1x128xf32> to vector<1x128xf32>
    %132 = vector.shape_cast %131 : vector<1x128xf32> to vector<1x128xf32>
    %133 = vector.broadcast %132 : vector<1x128xf32> to vector<4x128xf32>
    %c1_107 = arith.constant 1 : index
    %c1_108 = arith.constant 1 : index
    %c2_109 = arith.constant 2 : index
    %c0_110 = arith.constant 0 : index
    %134 = vector.load %arg2[%c1_107, %c1_108, %c2_109, %c0_110] : memref<2x2x4x128xf32, #tpu.memory_space<vmem>>, vector<1x1x1x128xf32>
    %135 = vector.shape_cast %134 : vector<1x1x1x128xf32> to vector<1x128xf32>
    %136 = vector.shape_cast %135 : vector<1x128xf32> to vector<1x128xf32>
    %137 = vector.broadcast %136 : vector<1x128xf32> to vector<4x128xf32>
    %c0_111 = arith.constant 0 : index
    %c2_112 = arith.constant 2 : index
    %c0_113 = arith.constant 0 : index
    %c0_114 = arith.constant 0 : index
    %138 = vector.load %arg3[%c0_111, %c2_112, %c0_113, %c0_114] : memref<2x4x4x128xf32, #tpu.memory_space<vmem>>, vector<1x1x4x128xf32>
    %139 = vector.shape_cast %138 : vector<1x1x4x128xf32> to vector<4x128xf32>
    %c1_115 = arith.constant 1 : index
    %c2_116 = arith.constant 2 : index
    %c0_117 = arith.constant 0 : index
    %c0_118 = arith.constant 0 : index
    %140 = vector.load %arg3[%c1_115, %c2_116, %c0_117, %c0_118] : memref<2x4x4x128xf32, #tpu.memory_space<vmem>>, vector<1x1x4x128xf32>
    %141 = vector.shape_cast %140 : vector<1x1x4x128xf32> to vector<4x128xf32>
    %142 = arith.mulf %133, %139 : vector<4x128xf32>
    %143 = arith.mulf %137, %141 : vector<4x128xf32>
    %144 = arith.subf %142, %143 : vector<4x128xf32>
    %145 = arith.addf %125, %144 : vector<4x128xf32>
    %146 = arith.mulf %133, %141 : vector<4x128xf32>
    %147 = arith.mulf %137, %139 : vector<4x128xf32>
    %148 = arith.addf %146, %147 : vector<4x128xf32>
    %149 = arith.addf %129, %148 : vector<4x128xf32>
    %c0_119 = arith.constant 0 : index
    %c1_120 = arith.constant 1 : index
    %c3_121 = arith.constant 3 : index
    %c0_122 = arith.constant 0 : index
    %150 = vector.load %arg2[%c0_119, %c1_120, %c3_121, %c0_122] : memref<2x2x4x128xf32, #tpu.memory_space<vmem>>, vector<1x1x1x128xf32>
    %151 = vector.shape_cast %150 : vector<1x1x1x128xf32> to vector<1x128xf32>
    %152 = vector.shape_cast %151 : vector<1x128xf32> to vector<1x128xf32>
    %153 = vector.broadcast %152 : vector<1x128xf32> to vector<4x128xf32>
    %c1_123 = arith.constant 1 : index
    %c1_124 = arith.constant 1 : index
    %c3_125 = arith.constant 3 : index
    %c0_126 = arith.constant 0 : index
    %154 = vector.load %arg2[%c1_123, %c1_124, %c3_125, %c0_126] : memref<2x2x4x128xf32, #tpu.memory_space<vmem>>, vector<1x1x1x128xf32>
    %155 = vector.shape_cast %154 : vector<1x1x1x128xf32> to vector<1x128xf32>
    %156 = vector.shape_cast %155 : vector<1x128xf32> to vector<1x128xf32>
    %157 = vector.broadcast %156 : vector<1x128xf32> to vector<4x128xf32>
    %c0_127 = arith.constant 0 : index
    %c3_128 = arith.constant 3 : index
    %c0_129 = arith.constant 0 : index
    %c0_130 = arith.constant 0 : index
    %158 = vector.load %arg3[%c0_127, %c3_128, %c0_129, %c0_130] : memref<2x4x4x128xf32, #tpu.memory_space<vmem>>, vector<1x1x4x128xf32>
    %159 = vector.shape_cast %158 : vector<1x1x4x128xf32> to vector<4x128xf32>
    %c1_131 = arith.constant 1 : index
    %c3_132 = arith.constant 3 : index
    %c0_133 = arith.constant 0 : index
    %c0_134 = arith.constant 0 : index
    %160 = vector.load %arg3[%c1_131, %c3_132, %c0_133, %c0_134] : memref<2x4x4x128xf32, #tpu.memory_space<vmem>>, vector<1x1x4x128xf32>
    %161 = vector.shape_cast %160 : vector<1x1x4x128xf32> to vector<4x128xf32>
    %162 = arith.mulf %153, %159 : vector<4x128xf32>
    %163 = arith.mulf %157, %161 : vector<4x128xf32>
    %164 = arith.subf %162, %163 : vector<4x128xf32>
    %165 = arith.addf %145, %164 : vector<4x128xf32>
    %166 = arith.mulf %153, %161 : vector<4x128xf32>
    %167 = arith.mulf %157, %159 : vector<4x128xf32>
    %168 = arith.addf %166, %167 : vector<4x128xf32>
    %169 = arith.addf %149, %168 : vector<4x128xf32>
    %c0_135 = arith.constant 0 : index
    %c1_136 = arith.constant 1 : index
    %c0_137 = arith.constant 0 : index
    %c0_138 = arith.constant 0 : index
    %170 = vector.load %arg4[%c0_135, %c1_136, %c0_137, %c0_138] : memref<2x2x4x128xf32, #tpu.memory_space<vmem>>, vector<1x1x4x128xf32>
    %171 = vector.shape_cast %170 : vector<1x1x4x128xf32> to vector<4x128xf32>
    %172 = vector.shape_cast %165 : vector<4x128xf32> to vector<1x1x4x128xf32>
    tpu.vector_store %arg4[%c0_135, %c1_136, %c0_137, %c0_138], %172 {strides = array<i32>} : memref<2x2x4x128xf32, #tpu.memory_space<vmem>>, vector<1x1x4x128xf32>,
    %c1_139 = arith.constant 1 : index
    %c1_140 = arith.constant 1 : index
    %c0_141 = arith.constant 0 : index
    %c0_142 = arith.constant 0 : index
    %173 = vector.load %arg4[%c1_139, %c1_140, %c0_141, %c0_142] : memref<2x2x4x128xf32, #tpu.memory_space<vmem>>, vector<1x1x4x128xf32>
    %174 = vector.shape_cast %173 : vector<1x1x4x128xf32> to vector<4x128xf32>
    %175 = vector.shape_cast %169 : vector<4x128xf32> to vector<1x1x4x128xf32>
    tpu.vector_store %arg4[%c1_139, %c1_140, %c0_141, %c0_142], %175 {strides = array<i32>} : memref<2x2x4x128xf32, #tpu.memory_space<vmem>>, vector<1x1x4x128xf32>,
    return
  }
  func.func @transform_0(%arg0: i32, %arg1: i32) -> (i32, i32, i32, i32) {
    %c0_i32 = arith.constant 0 : i32
    %c0_i32_0 = arith.constant 0 : i32
    %c0_i32_1 = arith.constant 0 : i32
    return %c0_i32, %arg1, %c0_i32_0, %arg0 : i32, i32, i32, i32
  }
  func.func @transform_1(%arg0: i32, %arg1: i32) -> (i32, i32, i32, i32) {
    %c0_i32 = arith.constant 0 : i32
    %c0_i32_0 = arith.constant 0 : i32
    %c0_i32_1 = arith.constant 0 : i32
    %c0_i32_2 = arith.constant 0 : i32
    return %c0_i32, %c0_i32_0, %c0_i32_1, %arg0 : i32, i32, i32, i32
  }
  func.func @transform_2(%arg0: i32, %arg1: i32) -> (i32, i32, i32, i32) {
    %c0_i32 = arith.constant 0 : i32
    %c0_i32_0 = arith.constant 0 : i32
    %c0_i32_1 = arith.constant 0 : i32
    return %c0_i32, %arg1, %c0_i32_0, %arg0 : i32, i32, i32, i32
  }
}

</mosaic_0001>

<bundles_post_ra>
// kernel: _spectral_forward.1
= control target key start
LH: loop header
LB: loop body
LE: loop exit
PB: predicated region body
PF: predicated region fallthrough
CT: control target
= control target key end

     0   :  { %s360_s0 = inlined_call_operand.vmem [shape: f32[2,2,4,128], index: 0, kind: input, shape index: {}]   ;;  %s361_s1 = inlined_call_operand.vmem [shape: f32[2,4,4,128], index: 1, kind: input, shape index: {}]   ;;  %s362_s2 = inlined_call_operand.vmem [shape: f32[2,2,4,128], index: 2, kind: output, shape index: {}]  }
   0x1   :  { %v192_v0 = vld [vmem:[%s360_s0] ss:$0 sm:$0xff]  ;;  %v194_v1 = vld [vmem:[%s360_s0 + $0x8] ss:$0 sm:$0xff]  ;;  %v195_v3 = vld [vmem:[%s361_s1 + $0x10] sm:$0xf] }
   0x2   :  { %v22_v2 = vld [vmem:[%s361_s1] sm:$0xf]  ;;  %v198_v6 = vld [vmem:[%s360_s0 + $0x9] ss:$0 sm:$0xff]  ;;  %v26_v8 = vmul.f32 %v195_v3, %v194_v1  ;;  %v199_v9 = vld [vmem:[%s361_s1 + $0x4] sm:$0xf]  ;;  %v29_v12 = vmul.f32 %v195_v3, %v192_v0 }
   0x3   :  { %v25_v4 = vmul.f32 %v192_v0, %v22_v2  ;;  %v196_v5 = vld [vmem:[%s360_s0 + $0x1] ss:$0 sm:$0xff]  ;;  %v30_v7 = vmul.f32 %v194_v1, %v22_v2  ;;  %v200_v10 = vld [vmem:[%s361_s1 + $0x14] sm:$0xf]  ;;  %v201_v11 = vld [vmem:[%s360_s0 + $0x2] ss:$0 sm:$0xff]  ;;  %v52_v19 = vmul.f32 %v199_v9, %v198_v6 }
   0x4   :  { %v47_v13 = vmul.f32 %v199_v9, %v196_v5  ;;  %v48_v14 = vmul.f32 %v200_v10, %v198_v6  ;;  %v203_v15 = vld [vmem:[%s360_s0 + $0xa] ss:$0 sm:$0xff]  ;;  %v205_v17 = vld [vmem:[%s361_s1 + $0x18] sm:$0xf]  ;;  %v51_v18 = vmul.f32 %v200_v10, %v196_v5  ;;  %v206_v23 = vld [vmem:[%s360_s0 + $0x3] ss:$0 sm:$0xff] }
   0x5   :  { %v204_v16 = vld [vmem:[%s361_s1 + $0x8] sm:$0xf]  ;;  %v27_v20 = vsub.f32 %v25_v4, %v26_v8  ;;  %v70_v22 = vmul.f32 %v205_v17, %v203_v15  ;;  %v209_v25 = vld [vmem:[%s361_s1 + $0xc] sm:$0xf]  ;;  %v31_v26 = vadd.f32 %v30_v7, %v29_v12  ;;  %v210_v28 = vld [vmem:[%s361_s1 + $0x1c] sm:$0xf]  ;;  %v73_v31 = vmul.f32 %v205_v17, %v201_v11 }
   0x6   :  { %v69_v21 = vmul.f32 %v204_v16, %v201_v11  ;;  %v208_v24 = vld [vmem:[%s360_s0 + $0xb] ss:$0 sm:$0xff]  ;;  %v49_v27 = vsub.f32 %v47_v13, %v48_v14  ;;  %v91_v29 = vmul.f32 %v209_v25, %v206_v23  ;;  %v53_v30 = vadd.f32 %v52_v19, %v51_v18  ;;  %v213_v32 = vld [vmem:[%s360_s0 + $0x4] ss:$0 sm:$0xff]  ;;  %v215_v33 = vld [vmem:[%s360_s0 + $0xc] ss:$0 sm:$0xff] }
   0x7   :  { %v92_v35 = vmul.f32 %v210_v28, %v208_v24  ;;  %v74_v36 = vmul.f32 %v204_v16, %v203_v15  ;;  %v95_v37 = vmul.f32 %v210_v28, %v206_v23  ;;  %v114_v38 = vld [vmem:[%s361_s1] sm:$0xf]  ;;  %v216_v39 = vld [vmem:[%s361_s1 + $0x10] sm:$0xf]  ;;  %v218_v40 = vld [vmem:[%s360_s0 + $0x5] ss:$0 sm:$0xff]  ;;  %v96_v43 = vmul.f32 %v209_v25, %v208_v24 }
   0x8   :  { %v71_v34 = vsub.f32 %v69_v21, %v70_v22  ;;  %v50_v41 = vadd.f32 %v49_v27, %v27_v20  ;;  %v54_v42 = vadd.f32 %v53_v30, %v31_v26  ;;  %v116_v44 = vmul.f32 %v213_v32, %v114_v38  ;;  %v220_v45 = vld [vmem:[%s360_s0 + $0xd] ss:$0 sm:$0xff]  ;;  %v221_v46 = vld [vmem:[%s361_s1 + $0x4] sm:$0xf]  ;;  %v222_v47 = vld [vmem:[%s361_s1 + $0x14] sm:$0xf] }
   0x9   :  { %v93_v48 = vsub.f32 %v91_v29, %v92_v35  ;;  %v75_v49 = vadd.f32 %v74_v36, %v73_v31  ;;  %v117_v50 = vmul.f32 %v216_v39, %v215_v33  ;;  %v136_v51 = vmul.f32 %v221_v46, %v218_v40  ;;  %v224_v52 = vld [vmem:[%s360_s0 + $0x6] ss:$0 sm:$0xff]  ;;  %v226_v53 = vld [vmem:[%s360_s0 + $0xe] ss:$0 sm:$0xff]  ;;  %v227_v54 = vld [vmem:[%s361_s1 + $0x8] sm:$0xf] }
   0xa   :  { %v72_v55 = vadd.f32 %v71_v34, %v50_v41  ;;  %v97_v56 = vadd.f32 %v96_v43, %v95_v37  ;;  %v137_v57 = vmul.f32 %v222_v47, %v220_v45  ;;  %v228_v58 = vld [vmem:[%s361_s1 + $0x18] sm:$0xf]  ;;  %v156_v59 = vmul.f32 %v227_v54, %v224_v52  ;;  %v230_v60 = vld [vmem:[%s360_s0 + $0x7] ss:$0 sm:$0xff]  ;;  %v232_v61 = vld [vmem:[%s360_s0 + $0xf] ss:$0 sm:$0xff] }
   0xb   :  { %v76_v62 = vadd.f32 %v75_v49, %v54_v42  ;;  %v118_v63 = vsub.f32 %v116_v44, %v117_v50  ;;  %v157_v0 = vmul.f32 %v228_v58, %v226_v53  ;;  %v233_v1 = vld [vmem:[%s361_s1 + $0xc] sm:$0xf]  ;;  %v234_v2 = vld [vmem:[%s361_s1 + $0x1c] sm:$0xf]  ;;  %v120_v3 = vmul.f32 %v216_v39, %v213_v32 }
   0xc   :  { %v94_v4 = vadd.f32 %v93_v48, %v72_v55  ;;  %v138_v5 = vsub.f32 %v136_v51, %v137_v57  ;;  %v176_v6 = vmul.f32 %v233_v1, %v230_v60  ;;  %v177_v7 = vmul.f32 %v234_v2, %v232_v61 }
   0xd   :  { %v98_v8 = vadd.f32 %v97_v56, %v76_v62  ;;  %v158_v9 = vsub.f32 %v156_v59, %v157_v0  ;;  %v121_v10 = vmul.f32 %v215_v33, %v114_v38  ;;  %v140_v11 = vmul.f32 %v222_v47, %v218_v40 }
   0xe   :  { %99 = vst [vmem:[%s362_s2] sm:$0xf] %v94_v4  ;;  %v139_v12 = vadd.f32 %v138_v5, %v118_v63  ;;  %v178_v13 = vsub.f32 %v176_v6, %v177_v7  ;;  %v141_v14 = vmul.f32 %v221_v46, %v220_v45  ;;  %v160_v15 = vmul.f32 %v228_v58, %v224_v52 }
   0xf   :  { %211 = vst [vmem:[%s362_s2 + $0x8] sm:$0xf] %v98_v8  ;;  %v122_v16 = vadd.f32 %v121_v10, %v120_v3  ;;  %v161_v17 = vmul.f32 %v227_v54, %v226_v53  ;;  %v180_v18 = vmul.f32 %v234_v2, %v230_v60  ;;  %v181_v19 = vmul.f32 %v233_v1, %v232_v61 }
  0x10   :  { %v159_v20 = vadd.f32 %v158_v9, %v139_v12  ;;  %v142_v21 = vadd.f32 %v141_v14, %v140_v11 }
  0x11   :  { %v162_v22 = vadd.f32 %v161_v17, %v160_v15  ;;  %v182_v25 = vadd.f32 %v181_v19, %v180_v18 }
  0x12   :  { %v179_v23 = vadd.f32 %v178_v13, %v159_v20  ;;  %v143_v24 = vadd.f32 %v142_v21, %v122_v16 }
  0x14   :  { %235 = vst [vmem:[%s362_s2 + $0x4] sm:$0xf] %v179_v23  ;;  %v163_v26 = vadd.f32 %v162_v22, %v143_v24 }
  0x16   :  { %v183_v27 = vadd.f32 %v182_v25, %v163_v26 }
  0x18   :  { %236 = vst [vmem:[%s362_s2 + $0xc] sm:$0xf] %v183_v27 }

// kernel: reverse.0
= control target key start
LH: loop header
LB: loop body
LE: loop exit
PB: predicated region body
PF: predicated region fallthrough
CT: control target
= control target key end

     0   :  { %v71_v3 = vlaneseq  ;;  %v64_v9 = vld [vmem:[#allocation0 + $0x7] ss:$-1 sm:$0xff]  ;;  %v78_v12 = vld [vmem:[#allocation0 + $0x17] ss:$-1 sm:$0xff]  ;;  %s329_s0 = inlined_call_operand.vmem [shape: f32[2,4,16,7], index: 0, kind: input, shape index: {}]   ;;  %s330_s1 = inlined_call_operand.vmem [shape: f32[2,4,16,7], index: 1, kind: output, shape index: {}]  }
   0x1   :  { %v44_v0 = vld [vmem:[%s329_s0] sm:$0xff]  ;;  %v46_v1 = vld [vmem:[%s329_s0 + $0x8] sm:$0xff]  ;;  %v48_v2 = vld [vmem:[%s329_s0 + $0x10] sm:$0xff]  ;;  %v65_v10 = vrot.slane %v64_v9, 1  ;;  %v79_v14 = vrot.slane %v78_v12, 1 }
   0x2   :  { %45 = vst [vmem:[#allocation0 + $0x8] sm:$0xff] %v44_v0  ;;  %47 = vst [vmem:[#allocation0 + $0x18] sm:$0xff] %v46_v1  ;;  %v50_v4 = vld [vmem:[%s329_s0 + $0x18] sm:$0xff]  ;;  %v52_v5 = vld [vmem:[%s329_s0 + $0x20] sm:$0xff]  ;;  %v72_v11 = vshrl.u32 %v71_v3, 7 }
   0x3   :  { %49 = vst [vmem:[#allocation0 + $0x28] sm:$0xff] %v48_v2  ;;  %v54_v6 = vld [vmem:[%s329_s0 + $0x28] sm:$0xff]  ;;  %51 = vst [vmem:[#allocation0 + $0x38] sm:$0xff] %v50_v4  ;;  %v56_v7 = vld [vmem:[%s329_s0 + $0x30] sm:$0xff] }
   0x4   :  { %53 = vst [vmem:[#allocation0 + $0x48] sm:$0xff] %v52_v5  ;;  %55 = vst [vmem:[#allocation0 + $0x58] sm:$0xff] %v54_v6  ;;  %v58_v8 = vld [vmem:[%s329_s0 + $0x38] sm:$0xff]  ;;  %v92_v13 = vld [vmem:[#allocation0 + $0x27] ss:$-1 sm:$0xff]  ;;  %vm73_vm0 = vcmp.lt.s32.totalorder %v72_v11, 7 }
   0x5   :  { %57 = vst [vmem:[#allocation0 + $0x68] sm:$0xff] %v56_v7  ;;  %59 = vst [vmem:[#allocation0 + $0x78] sm:$0xff] %v58_v8  ;;  %v93_v15 = vrot.slane %v92_v13, 1  ;;  %v106_v16 = vld [vmem:[#allocation0 + $0x37] ss:$-1 sm:$0xff] }
   0x6   :  { %66 = vst [vmem:[#allocation1] sm:$0xff] %v65_v10  ;;  %v107_v17 = vrot.slane %v106_v16, 1  ;;  %v120_v18 = vld [vmem:[#allocation0 + $0x47] ss:$-1 sm:$0xff]  ;;  %v134_v19 = vld [vmem:[#allocation0 + $0x57] ss:$-1 sm:$0xff] }
   0x7   :  { %80 = vst [vmem:[#allocation1 + $0x8] sm:$0xff] %v79_v14  ;;  %94 = vst [vmem:[#allocation1 + $0x10] sm:$0xff] %v93_v15  ;;  %v121_v20 = vrot.slane %v120_v18, 1  ;;  %v135_v21 = vrot.slane %v134_v19, 1  ;;  %v148_v22 = vld [vmem:[#allocation0 + $0x67] ss:$-1 sm:$0xff] }
   0x8   :  { %v162_v23 = vld [vmem:[#allocation0 + $0x77] ss:$-1 sm:$0xff]  ;;  %108 = vst [vmem:[#allocation1 + $0x18] sm:$0xff] %v107_v17  ;;  %v149_v24 = vrot.slane %v148_v22, 1 }
   0x9   :  { %v163_v25 = vrot.slane %v162_v23, 1  ;;  %v69_v26 = vld [vmem:[#allocation0 + $0xf] ss:$-1 sm:$0xff]  ;;  %v83_v27 = vld [vmem:[#allocation0 + $0x1f] ss:$-1 sm:$0xff]  ;;  %122 = vst [vmem:[#allocation1 + $0x20] sm:$0xff] %v121_v20 }
   0xa   :  { %v97_v28 = vld [vmem:[#allocation0 + $0x2f] ss:$-1 sm:$0xff]  ;;  %136 = vst [vmem:[#allocation1 + $0x28] sm:$0xff] %v135_v21  ;;  %v70_v29 = vrot.slane %v69_v26, 1  ;;  %v84_v30 = vrot.slane %v83_v27, 1  ;;  %150 = vst [vmem:[#allocation1 + $0x30] sm:$0xff] %v149_v24 }
   0xb   :  { %v98_v31 = vrot.slane %v97_v28, 1  ;;  %v111_v32 = vld [vmem:[#allocation0 + $0x3f] ss:$-1 sm:$0xff]  ;;  %164 = vst [vmem:[#allocation1 + $0x38] sm:$0xff] %v163_v25  ;;  %v125_v34 = vld [vmem:[#allocation0 + $0x4f] ss:$-1 sm:$0xff] }
   0xc   :  { %v112_v33 = vrot.slane %v111_v32, 1  ;;  %v139_v35 = vld [vmem:[#allocation0 + $0x5f] ss:$-1 sm:$0xff]  ;;  %74 = vst.msk [vmem:[#allocation1] sm:$0xff] %vm73_vm0, %v70_v29  ;;  %88 = vst.msk [vmem:[#allocation1 + $0x8] sm:$0xff] %vm73_vm0, %v84_v30  ;;  %v126_v36 = vrot.slane %v125_v34, 1 }
   0xd   :  { %102 = vst.msk [vmem:[#allocation1 + $0x10] sm:$0xff] %vm73_vm0, %v98_v31  ;;  %v140_v37 = vrot.slane %v139_v35, 1  ;;  %v153_v38 = vld [vmem:[#allocation0 + $0x6f] ss:$-1 sm:$0xff]  ;;  %v167_v39 = vld [vmem:[#allocation0 + $0x7f] ss:$-1 sm:$0xff] }
   0xe   :  { %116 = vst.msk [vmem:[#allocation1 + $0x18] sm:$0xff] %vm73_vm0, %v112_v33  ;;  %v154_v40 = vrot.slane %v153_v38, 1  ;;  %v168_v41 = vrot.slane %v167_v39, 1  ;;  %130 = vst.msk [vmem:[#allocation1 + $0x20] sm:$0xff] %vm73_vm0, %v126_v36 }
   0xf   :  { %144 = vst.msk [vmem:[#allocation1 + $0x28] sm:$0xff] %vm73_vm0, %v140_v37 }
  0x10   :  { %158 = vst.msk [vmem:[#allocation1 + $0x30] sm:$0xff] %vm73_vm0, %v154_v40  ;;  %172 = vst.msk [vmem:[#allocation1 + $0x38] sm:$0xff] %vm73_vm0, %v168_v41 }
  0x13   :  { %v214_v42 = vld [vmem:[#allocation1] sm:$0xff]  ;;  %v216_v43 = vld [vmem:[#allocation1 + $0x8] sm:$0xff] }
  0x14   :  { %v218_v44 = vld [vmem:[#allocation1 + $0x10] sm:$0xff]  ;;  %215 = vst [vmem:[%s330_s1] sm:$0xff] %v214_v42  ;;  %217 = vst [vmem:[%s330_s1 + $0x8] sm:$0xff] %v216_v43 }
  0x15   :  { %219 = vst [vmem:[%s330_s1 + $0x10] sm:$0xff] %v218_v44  ;;  %v220_v45 = vld [vmem:[#allocation1 + $0x18] sm:$0xff]  ;;  %v222_v46 = vld [vmem:[#allocation1 + $0x20] sm:$0xff] }
  0x16   :  { %221 = vst [vmem:[%s330_s1 + $0x18] sm:$0xff] %v220_v45  ;;  %v224_v47 = vld [vmem:[#allocation1 + $0x28] sm:$0xff]  ;;  %223 = vst [vmem:[%s330_s1 + $0x20] sm:$0xff] %v222_v46 }
  0x17   :  { %225 = vst [vmem:[%s330_s1 + $0x28] sm:$0xff] %v224_v47  ;;  %v226_v48 = vld [vmem:[#allocation1 + $0x30] sm:$0xff]  ;;  %v228_v49 = vld [vmem:[#allocation1 + $0x38] sm:$0xff] }
  0x18   :  { %227 = vst [vmem:[%s330_s1 + $0x30] sm:$0xff] %v226_v48  ;;  %229 = vst [vmem:[%s330_s1 + $0x38] sm:$0xff] %v228_v49 }

</bundles_post_ra>
